<compile_context>
chip_gen: v7x
topology: tpu7x:2x2x1
jax: 0.10.0
libtpu: 0.0.40
codegen_flags: <defaults>
</compile_context>

<pallas_src>
import random
from functools import lru_cache

import numpy as np
import jax
import jax.numpy as jnp
from jax.experimental import pallas as pl
from jax.experimental.pallas import tpu as pltpu

_A = -0.75  # PyTorch bicubic convolution coefficient


def _cc1(x):  # |x| <= 1
    return ((_A + 2.0) * x - (_A + 3.0)) * x * x + 1.0


def _cc2(x):  # 1 < |x| < 2
    return ((_A * x - 5.0 * _A) * x + 8.0 * _A) * x - 4.0 * _A


@lru_cache(maxsize=256)
def _bicubic_matrix_np(out_size, in_size):
    """Host reference: dense (out,in) torch-bicubic (align_corners=True) matrix."""
    W = np.zeros((out_size, in_size), dtype=np.float64)
    scale = (in_size - 1) / (out_size - 1) if out_size > 1 else 0.0
    src = np.arange(out_size, dtype=np.float64) * scale
    x0 = np.floor(src).astype(np.int64)
    t = src - x0
    coeffs = [_cc2(t + 1.0), _cc1(t), _cc1(1.0 - t), _cc2(2.0 - t)]
    rows = np.arange(out_size)
    for k, ck in enumerate(coeffs):
        idx = np.clip(x0 - 1 + k, 0, in_size - 1)  # border clamp, like PyTorch
        np.add.at(W, (rows, idx), ck)
    return W.astype(np.float32)


def _folded_weight_device(out_size, src_size, paste_off, crop_off, crop_size,
                          dtype, transpose=False):
    """Device-built (out,src) matrix (or its transpose) folding
    [zero-pad canvas -> crop(crop_off, crop_size) -> bicubic resize to out_size]
    onto the original src axis.

    out_size / src_size / paste_off are static Python ints; crop_off / crop_size
    may be traced int32 scalars, so the shapes never change per call and only
    scalars cross PCIe.  align_corners=True, border clamp.  Canvas columns
    outside the pasted src region hold zeros, so taps landing there are dropped
    exactly (their column index never matches a src column).
    """
    crop_f = crop_size.astype(jnp.float32)
    scale = (crop_f - 1.0) / float(out_size - 1) if out_size > 1 else jnp.float32(0.0)
    src = jnp.arange(out_size, dtype=jnp.float32) * scale
    x0 = jnp.floor(src)
    t = src - x0
    x0i = x0.astype(jnp.int32)
    coeffs = (_cc2(t + 1.0), _cc1(t), _cc1(1.0 - t), _cc2(2.0 - t))
    cols = jnp.arange(src_size, dtype=jnp.int32)
    shift = crop_off - paste_off                       # crop col -> src col
    shape = (src_size, out_size) if transpose else (out_size, src_size)
    w = jnp.zeros(shape, dtype=jnp.float32)
    for ck, k in zip(coeffs, range(4)):
        idx = jnp.clip(x0i - 1 + k, 0, crop_size - 1) + shift      # (out,)
        if transpose:
            w = w + jnp.where(cols[:, None] == idx[None, :], ck[None, :], 0.0)
        else:
            w = w + jnp.where(cols[None, :] == idx[:, None], ck[:, None], 0.0)
    return w.astype(dtype)


@lru_cache(maxsize=64)
def _get_warp_fn(C, F, T, paste_y, paste_x, with_time,
                 compute_dtype_name, out_dtype_name):
    """Jitted fn(lms, params[i,j,h,w]) -> warped (C,F,T); fixed shapes per key."""
    cd = jnp.dtype(compute_dtype_name)
    od = jnp.dtype(out_dtype_name)

    if with_time:
        def kernel(x_ref, wh_ref, wwt_ref, o_ref):
            xc = x_ref[0].astype(cd)                                   # (F, T)
            # Freq axis first -> live intermediate is one (F, T) slab.
            yf = jnp.dot(wh_ref[...], xc, preferred_element_type=jnp.float32)
            yt = jnp.dot(yf.astype(cd), wwt_ref[...],
                         preferred_element_type=jnp.float32)
            o_ref[0] = yt.astype(od)

        in_specs = [
            pl.BlockSpec((1, F, T), lambda c: (c, 0, 0)),
            pl.BlockSpec((F, F), lambda c: (0, 0)),     # resident across grid
            pl.BlockSpec((T, T), lambda c: (0, 0)),     # resident across grid
        ]
        flops = 2 * C * (F * F * T + F * T * T)
        wbytes = (F * F + T * T) * cd.itemsize
    else:
        def kernel(x_ref, wh_ref, o_ref):
            xc = x_ref[0].astype(cd)
            o_ref[0] = jnp.dot(wh_ref[...], xc,
                               preferred_element_type=jnp.float32).astype(od)

        in_specs = [
            pl.BlockSpec((1, F, T), lambda c: (c, 0, 0)),
            pl.BlockSpec((F, F), lambda c: (0, 0)),
        ]
        flops = 2 * C * F * F * T
        wbytes = F * F * cd.itemsize

    bytes_accessed = C * F * T * (4 + od.itemsize) + wbytes
    # Working set: double-buffered in/out channel blocks + resident weights
    # (pipeline double-buffers them too) + per-channel f32 intermediates.
    need = 2 * F * T * (4 + od.itemsize) + 2 * wbytes + 4 * F * T * 4
    vmem_limit = int(min(max(2 * need, 32 * 1024 * 1024), 64 * 1024 * 1024))

    call = pl.pallas_call(
        kernel,
        out_shape=jax.ShapeDtypeStruct((C, F, T), od),
        grid=(C,),
        in_specs=in_specs,
        out_specs=pl.BlockSpec((1, F, T), lambda c: (c, 0, 0)),
        compiler_params=pltpu.CompilerParams(
            dimension_semantics=("parallel",),
            vmem_limit_bytes=vmem_limit),
        cost_estimate=pl.CostEstimate(flops=flops, transcendentals=0,
                                      bytes_accessed=bytes_accessed),
    )

    def warp(lms, params):
        i, j, h, w = params[0], params[1], params[2], params[3]
        wh = _folded_weight_device(F, F, paste_y, i, h, cd)
        if with_time:
            wwt = _folded_weight_device(T, T, paste_x, j, w, cd, transpose=True)
            return call(lms, wh, wwt)
        return call(lms, wh)

    return jax.jit(warp)


class RandomResizeCrop:
    """JAX/Pallas port of the PyTorch RandomResizeCrop forward pass.

    The virtual-crop zero padding and the random crop are folded into dense
    square bicubic weight matrices built on-device from the four crop scalars,
    so the Pallas kernel always runs at fixed shapes:
        out[c] = Wh @ lms[c] (@ Ww^T),  Wh (F,F), Ww (T,T).
    The time-axis matmul is skipped when Ww is exactly the identity (the
    module's default configuration).
    """

    def __init__(self, virtual_crop_scale=(1.0, 1.0), freq_scale=(0.6, 1.0),
                 time_scale=(1.0, 1.0), compute_dtype=jnp.bfloat16,
                 out_dtype=jnp.float32):
        self.virtual_crop_scale = virtual_crop_scale
        self.freq_scale = freq_scale
        self.time_scale = time_scale
        # bf16 operands + f32 accumulation are MXU-native on v5e/v6e/v7x; pass
        # compute_dtype=jnp.float32 for a bit-closer match to PyTorch (slower
        # on v5e, where the MXU is bf16-native).
        self.compute_dtype = jnp.dtype(compute_dtype)
        self.out_dtype = jnp.dtype(out_dtype)
        assert time_scale[1] >= 1.0 and freq_scale[1] >= 1.0

    @staticmethod
    def get_params(virtual_crop_size, in_size, time_scale, freq_scale):
        # TODO(synk): host-side RNG (np.random / random) mirrors the PyTorch
        # module but keeps the op non-jittable end-to-end and not reproducible
        # under jax PRNG keys.
        canvas_h, canvas_w = virtual_crop_size
        src_h, src_w = in_size
        h = int(np.clip(int(np.random.uniform(*freq_scale) * src_h), 1, canvas_h))
        w = int(np.clip(int(np.random.uniform(*time_scale) * src_w), 1, canvas_w))
        i = random.randint(0, canvas_h - h) if canvas_h > h else 0
        j = random.randint(0, canvas_w - w) if canvas_w > w else 0
        return (i, j, h, w)

    def __call__(self, lms):
        lms = jnp.asarray(lms, jnp.float32)
        C, src_h, src_w = lms.shape
        canvas_h = int(src_h * self.virtual_crop_scale[0])
        canvas_w = int(src_w * self.virtual_crop_scale[1])
        paste_y, paste_x = (canvas_h - src_h) // 2, (canvas_w - src_w) // 2
        i, j, h, w = self.get_params((canvas_h, canvas_w), (src_h, src_w),
                                     self.time_scale, self.freq_scale)
        # Time transform is an exact identity iff the crop columns coincide
        # with the pasted lms columns and there is no time resize (always true
        # for the default config): skip that matmul and its weight build.
        with_time = not (w == src_w and j == paste_x)
        fn = _get_warp_fn(C, src_h, src_w, paste_y, paste_x, with_time,
                          self.compute_dtype.name, self.out_dtype.name)
        params = jnp.asarray([i, j, h, w], dtype=jnp.int32)
        return fn(lms, params)


if __name__ == "__main__":
    np.random.seed(0)
    random.seed(0)

    C, F, T = 4, 16, 16
    lms = jax.random.normal(jax.random.PRNGKey(0), (C, F, T), dtype=jnp.float32)
    lms_np = np.asarray(lms)

    # 1) Default module config (identity time axis -> single-matmul kernel).
    rrc = RandomResizeCrop()
    out = jax.block_until_ready(rrc(lms))
    assert out.shape == (C, F, T), out.shape
    assert out.dtype == jnp.float32, out.dtype
    assert bool(jnp.all(jnp.isfinite(out)))

    # 2) General config: virtual-crop canvas + time scaling, bf16-output option.
    rrc2 = RandomResizeCrop(virtual_crop_scale=(1.5, 1.5), freq_scale=(0.6, 1.0),
                            time_scale=(0.7, 1.3), out_dtype=jnp.bfloat16)
    out2 = jax.block_until_ready(rrc2(lms))
    assert out2.shape == (C, F, T) and out2.dtype == jnp.bfloat16
    assert bool(jnp.all(jnp.isfinite(out2.astype(jnp.float32))))

    # 3) Deterministic check of the freq-only path (canvas == input, identity
    #    time axis) against a plain numpy bicubic reference, f32 compute.
    ci, ch = 2, 11
    fn_f = _get_warp_fn(C, F, T, 0, 0, False, "float32", "float32")
    got_f = jax.block_until_ready(fn_f(lms, jnp.asarray([ci, 0, ch, T], jnp.int32)))
    ref_f = np.einsum("fh,chw->cfw", _bicubic_matrix_np(F, ch),
                      lms_np[:, ci:ci + ch, :])
    np.testing.assert_allclose(np.asarray(got_f), ref_f, rtol=1e-2, atol=1e-2)

    # 4) Deterministic check of the two-matmul path with virtual-crop padding:
    #    the crop partially overlaps the zero border of a 24x24 canvas.
    canvas_h, canvas_w = 24, 24
    py, px = (canvas_h - F) // 2, (canvas_w - T) // 2
    ci, cj, ch, cw = 3, 5, 12, 14
    fn_t = _get_warp_fn(C, F, T, py, px, True, "float32", "float32")
    got_t = jax.block_until_ready(fn_t(lms, jnp.asarray([ci, cj, ch, cw], jnp.int32)))
    canvas = np.zeros((C, canvas_h, canvas_w), np.float32)
    canvas[:, py:py + F, px:px + T] = lms_np
    crop = canvas[:, ci:ci + ch, cj:cj + cw]
    ref_t = np.einsum("fh,chw,tw->cft", _bicubic_matrix_np(F, ch), crop,
                      _bicubic_matrix_np(T, cw))
    np.testing.assert_allclose(np.asarray(got_t), ref_t, rtol=1e-2, atol=1e-2)

    # 5) Also exercise the bf16-compute two-matmul variant (the module's
    #    general-path default).
    fn_bf = _get_warp_fn(C, F, T, py, px, True, "bfloat16", "float32")
    got_bf = jax.block_until_ready(fn_bf(lms, jnp.asarray([ci, cj, ch, cw], jnp.int32)))
    np.testing.assert_allclose(np.asarray(got_bf), ref_t, rtol=5e-2, atol=5e-2)

    print("KERNEL_OK")
</pallas_src>

<mosaic_0001>
module attributes {stable_mosaic.version = 11 : i64} {
  func.func @kernel(%arg0: i32, %arg1: memref<1x16x16xf32, #tpu.memory_space<vmem>>, %arg2: memref<16x16xbf16, #tpu.memory_space<vmem>>, %arg3: memref<1x16x16xf32, #tpu.memory_space<vmem>>) attributes {dimension_semantics = [#tpu.dimension_semantics<parallel>], iteration_bounds = array<i64: 4>, scalar_prefetch = 0 : i64, scratch_operands = 0 : i64, tpu.core_type = #tpu.core_type<tc>, window_params = [{transform_indices = @transform_0, window_bounds = array<i64: 1, 16, 16>}, {pipeline_mode = #tpu.pipeline_mode<synchronous>, transform_indices = @transform_1, window_bounds = array<i64: 16, 16>}, {transform_indices = @transform_2, window_bounds = array<i64: 1, 16, 16>}]} {
    %c0 = arith.constant 0 : index
    %c0_0 = arith.constant 0 : index
    %c0_1 = arith.constant 0 : index
    %0 = vector.load %arg1[%c0, %c0_0, %c0_1] : memref<1x16x16xf32, #tpu.memory_space<vmem>>, vector<1x16x16xf32>
    %1 = vector.shape_cast %0 : vector<1x16x16xf32> to vector<16x16xf32>
    %2 = arith.truncf %1 : vector<16x16xf32> to vector<16x16xbf16>
    %c0_2 = arith.constant 0 : index
    %c0_3 = arith.constant 0 : index
    %3 = vector.load %arg2[%c0_2, %c0_3] : memref<16x16xbf16, #tpu.memory_space<vmem>>, vector<16x16xbf16>
    %cst = arith.constant dense<0.000000e+00> : vector<16x16xf32>
    %4 = tpu.matmul %3, %2, %cst {dimension_numbers = #tpu.dot_dimension_numbers<[1], [0], [0], [1], [0, 0, 1, 1], [], []>} : vector<16x16xbf16>, vector<16x16xbf16>, vector<16x16xf32> -> vector<16x16xf32>
    %c0_4 = arith.constant 0 : index
    %c0_5 = arith.constant 0 : index
    %c0_6 = arith.constant 0 : index
    %5 = vector.load %arg3[%c0_4, %c0_5, %c0_6] : memref<1x16x16xf32, #tpu.memory_space<vmem>>, vector<1x16x16xf32>
    %6 = vector.shape_cast %5 : vector<1x16x16xf32> to vector<16x16xf32>
    %7 = vector.shape_cast %4 : vector<16x16xf32> to vector<1x16x16xf32>
    tpu.vector_store %arg3[%c0_4, %c0_5, %c0_6], %7 {strides = array<i32>} : memref<1x16x16xf32, #tpu.memory_space<vmem>>, vector<1x16x16xf32>,
    return
  }
  func.func @transform_0(%arg0: i32) -> (i32, i32, i32) {
    %c0_i32 = arith.constant 0 : i32
    %c0_i32_0 = arith.constant 0 : i32
    %c0_i32_1 = arith.constant 0 : i32
    return %arg0, %c0_i32, %c0_i32_0 : i32, i32, i32
  }
  func.func @transform_1(%arg0: i32) -> (i32, i32) {
    %c0_i32 = arith.constant 0 : i32
    %c0_i32_0 = arith.constant 0 : i32
    %c0_i32_1 = arith.constant 0 : i32
    return %c0_i32, %c0_i32_0 : i32, i32
  }
  func.func @transform_2(%arg0: i32) -> (i32, i32, i32) {
    %c0_i32 = arith.constant 0 : i32
    %c0_i32_0 = arith.constant 0 : i32
    %c0_i32_1 = arith.constant 0 : i32
    return %arg0, %c0_i32, %c0_i32_0 : i32, i32, i32
  }
}

</mosaic_0001>

<bundles_post_ra>
// kernel: warp.1
= control target key start
LH: loop header
LB: loop body
LE: loop exit
PB: predicated region body
PF: predicated region fallthrough
CT: control target
= control target key end

     0   :  { %7 = vsyncpa [#allocation3], 0  ;;  %s534_s0 = inlined_call_operand.vmem [shape: f32[4,16,16], index: 0, kind: input, shape index: {}]   ;;  %s535_s1 = inlined_call_operand.vmem [shape: bf16[16,16], index: 1, kind: input, shape index: {}]   ;;  %s536_s2 = inlined_call_operand.hbm [shape: f32[4,16,16], index: 2, kind: output, shape index: {}]  }
   0x1   :  { %9 = vsyncpa [#allocation3 + $0x1], 0  ;;  %s428_s9 = smov 0   ;;  %s430_s10 = smov 0  }
   0x2   :  { %s432_s11 = smov 0   ;;  %s434_s12 = smov 0  }
   0x3 LB: > { %s449_s13 = sadd.s32 4294967295, %s406_s12   ;;  %s276_s14 = sadd.s32 4294967294, %s406_s12   ;;  %s406_s12 = sphi %s434_s12, %s542_s12   ;;  %s402_s11 = sphi %s432_s11, %s541_s11   ;;  %s398_s10 = sphi %s430_s10, %s540_s10   ;;  %s394_s9 = sphi %s428_s9, %s539_s9  }
   0x4   : > { %s453_s15 = sadd.s32 1, %s406_s12   ;;  %s69_s16 = sadd.s32 1, %s402_s11 }
   0x5   : > { %s66_s17 = ssub.s32 %s406_s12, %s453_s15  ;;  %p79_p0 = scmp.ne.s32.totalorder %s402_s11, %s398_s10 }
   0x6   : > { %p67_p1 = scmp.eq.s32.totalorder %s66_s17, 0  ;;  %p80_p2 = scmp.eq.s32.totalorder %s449_s13, 3 }
   0x7   : > { %p85_p3 = scmp.ne.s32.totalorder %s398_s10, %s394_s9  ;;  %p86_p4 = scmp.eq.s32.totalorder %s276_s14, 3 }
   0x8   : > { %s464_s18 = scalar_select %p67_p1, %s402_s11, %s69_s16  }
   0x9   : > { %p466_p5 = por %p80_p2, %p79_p0  ;;  %p470_p6 = por %p86_p4, %p85_p3 }
   0xa   : > { %p279_p7 = scmp.ge.s32.totalorder %s406_s12, 1  ;;  %p115_p8 = scmp.lt.s32.totalorder %s406_s12, 5 }
   0xc   : > { %p116_p9 = pnand %p279_p7, %p115_p8 }
   0xd   : > { %p137_p10 = scmp.lt.s32.totalorder (!%p116_p9), %s449_s13, 3  ;;  %v408_v0 = vmov (!%p116_p9), 0.0   ;;  %vm409_vm0 = vmmov (!%p116_p9), 0   ;;  %v343_v4 = vld [vmem:[%s535_s1] sm:$0xff] (!%p116_p9)   ;;  %vm153_vm1 = vcmask (!%p116_p9), 130048   ;;  %s134_s28 = sand.u32 (!%p116_p9), 1, %s398_s10  }
   0xe   : > { %119 = sbr.rel (%p116_p9) target bundleno = 260 (0x104), region = 28  ;;  %294 = vmatprep.subr.bf16.mxu0 (!%p116_p9), %v408_v0  ;;  %296 = vmatprep.mubr.msk.bf16.mxu0 (!%p116_p9), %vm409_vm0, %v408_v0  ;;  %s280_s29 = sshll.u32 (!%p116_p9), %s134_s28, 4 }
   0xf   : > { %s136_s30 = scalar_lea.vmem (!%p116_p9), [#allocation2], %s280_s29  ;;  %s291_s4 = sshll.u32 (!%p116_p9), %s449_s13, 8 }
  0x10   : > { %s214_s3 = sshll.u32 (!%p116_p9), %s136_s30, 4  ;;  %s491_s7 = scalar_lea.hbm (!%p116_p9), %s536_s2, %s291_s4  ;;  %s486_s3 = int_to_ptr.vmem [resolvable:$true] %s214_s3 }
  0x11   : > { %s493_s8 = scalar_lea.sflag (!%p116_p9), [#allocation3], %s134_s28  ;;  %s344_s14 = scalar_lea.vmem (!%p116_p9), %s486_s3, 256 }
  0x12   : > { %p345_p11 = scmp.ne.s32.totalorder (!%p116_p9), %s486_s3, %s344_s14 }
  0x14   : > { %p346_p12 = pnand (!%p116_p9), %p345_p11, %p466_p5 }
  0x15   : > { %s138_s21 = scalar_select %p137_p10, %s449_s13, 3 }
  0x16   : > { %p347_p13 = pneg %p346_p12  ;;  %s410_s13 = smov [#allocation2]  }
  0x17   : > { %s290_s22 = sshll.u32 %s138_s21, 4  ;;  %s348_s16 = sshll.u32 %s410_s13, 4  ;;  %s349_s16 = int_to_ptr.vmem [resolvable:$false] %s348_s16 }
  0x18   : > { %s141_s25 = scalar_lea.vmem %s534_s0, %s290_s22  ;;  %s350_s17 = scalar_lea.vmem %s349_s16, 512 }
  0x19   : > { %v143_v1 = vld [vmem:[%s141_s25] sm:$0xff]  ;;  %v144_v2 = vld [vmem:[%s141_s25 + $0x8] sm:$0xff]  ;;  %p351_p0 = scmp.lt.s32.totalorder %s486_s3, %s349_s16  ;;  %p352_p1 = scmp.lt.s32.totalorder %s350_s17, %s344_s14 }
  0x1a   : > { %v145_v3 = vpack.c.bf16 %v144_v2, %v143_v1 }
  0x1b   : > { %p353_p2 = por %p352_p1, %p351_p0 }
  0x1c   : > { %295 = vmatpush3.bf16.msra.mxu0 %v145_v3 }
  0x1d   : > { %p354_p3 = pnand %p353_p2, %p347_p13 }
  0x1f   : > { %297 = vmatmul.mubr.msk.bf16.vlgmr.msra.gmra.mrb[0].mxu0 %vm153_vm1, %v343_v4 }
  0xf2   : > { %v191_v5 = vpop.f32.mrb[0].mxu0 }
  0xf3   : > { %198 = vst.msk [vmem:[%s136_s30] sm:$0xff] %vm153_vm1, %v191_v5  ;;  %v298_v6 = vpop.f32.mrb[1].mxu0 }
  0xf4   : > { %v194_v7 = vpop.f32.mrb[2].mxu0 }
  0xf5   : > { %199 = vst.msk [vmem:[%s136_s30 + $0x8] sm:$0xff] %vm153_vm1, %v194_v7  ;;  %v299_v8 = vpop.f32.mrb[3].mxu0 }
  0xf6   : > { %357 = shalt.err (!%p354_p3)
}
  0xf7   : > { %s358_s21 = scalar_lea.hbm %s491_s7, 256  ;;  %s362_s24 = scalar_lea.hbm %s536_s2, 1024 }
  0xf8   : > { %p359_p4 = scmp.ne.s32.totalorder %s491_s7, %s358_s21  ;;  %p363_p9 = scmp.lt.u32.totalorder %s491_s7, %s536_s2 }
  0xf9   : > { %p364_p10 = scmp.lt.u32.totalorder %s362_s24, %s358_s21  ;;  %p366_p12 = scmp.lt.u32.totalorder %s358_s21, %s491_s7 }
  0xfa   : > { %p360_p7 = pnand %p359_p4, %p466_p5 }
  0xfb   : > { %p365_p11 = por %p364_p10, %p363_p9 }
  0xfc   : > { %p361_p8 = pneg %p360_p7 }
  0xfd   : > { %p367_p13 = por %p366_p12, %p365_p11 }
  0xff   : > { %p368_p0 = pnand %p367_p13, %p361_p8 }
 0x101   : > { %371 = shalt.err (!%p368_p0)
}
 0x102   : > { %s411_s27 = smov 128   ;;  %s412_s28 = smov 8  }
 0x103   : > { %300 = dma.vmem_to_hbm [thread:$0]  (%p466_p5), %s486_s3, 256, %s491_s7, %s493_s8, %s411_s27, %s411_s27, %s412_s28  }
 0x104 PF: > { %p306_p1 = scmp.ge.s32.totalorder %s406_s12, 2  ;;  %s229_s29 = sand.u32 1, %s394_s9  }
 0x105   : > { %s230_s30 = scalar_lea.sflag [#allocation3], %s229_s29 }
 0x106   : > { %p303_p2 = pnand %p306_p1, %p470_p6 }
 0x108   : > { %389 = dma.done.wait (!%p303_p2), %s230_s30, 256  }
 0x109   : > { %391 = vsyncadd (!%p303_p2), %s230_s30, 4294967040  ;;  %p12_p3 = scmp.ge.s32.totalorder %s453_s15, 6   ;;  %s539_s9 = smov %s398_s10 }
 0x10a   : > { %s540_s10 = smov %s402_s11  ;;  %s541_s11 = smov %s464_s18 }
 0x10b   : > { %s542_s12 = smov %s453_s15  ;;  %14 = sbr.rel (!%p12_p3) target bundleno = 3 (0x3), region = 63 }
 0x112   :  { %235 = vsyncpa [#allocation3], 1 }
 0x113   :  { %237 = vsyncpa [#allocation3 + $0x1], 1 }

</bundles_post_ra>
